<compile_context>
chip_gen: v6e
topology: v6e:2x2x1
jax: 0.10.0
libtpu: 0.0.40
codegen_flags: <defaults>
</compile_context>

<pallas_src>
import jax
import jax.numpy as jnp
from jax.experimental import pallas as pl
from jax.experimental.pallas import tpu as pltpu


def _soft_jaccard_kernel(logits_ref, tgt_ref, out_ref):
    # out_ref is the (C, 3) partial for this (image, split); it stays resident
    # in VMEM across the (innermost, "arbitrary") pixel-tile axis.
    @pl.when(pl.program_id(2) == 0)
    def _():
        out_ref[...] = jnp.zeros_like(out_ref)

    logits = logits_ref[...].astype(jnp.float32)            # (C, TP)
    C = logits.shape[0]

    # Channel softmax over sublanes; approximate reciprocal runs on the EUP.
    m = jnp.max(logits, axis=0, keepdims=True)              # (1, TP)
    e = jnp.exp(logits - m)
    denom = jnp.sum(e, axis=0, keepdims=True)               # (1, TP)
    preds = e * pl.reciprocal(denom, approx=True)           # (C, TP)

    # One-hot via broadcast against a (C, 1) iota -- no full-tile iota.
    tgt_m1 = tgt_ref[...].astype(jnp.int32) - 1             # (1, TP)
    class_ids = jax.lax.broadcasted_iota(jnp.int32, (C, 1), 0)
    onehot = (class_ids == tgt_m1).astype(jnp.float32)      # (C, TP)

    # Per-tile lane reductions into the tiny resident output block.
    inter = jnp.sum(preds * onehot, axis=1, keepdims=True)  # (C, 1)
    psum = jnp.sum(preds, axis=1, keepdims=True)            # (C, 1)
    tsum = jnp.sum(onehot, axis=1, keepdims=True)           # (C, 1)
    out_ref[...] += jnp.concatenate([inter, psum, tsum], axis=1)  # (C, 3)


def soft_jaccard_loss(pred_logits, targets, num_classes, eps=1e-5):
    """pred_logits: (N, C, H, W) float; targets: (N, H, W) int (1-indexed labels)."""
    N, C, H, W = pred_logits.shape
    assert C == num_classes
    HW = H * W
    LANE = 128

    # Narrow target HBM stream (labels are 1..num_classes); int32 fallback for
    # unusually large class counts.
    tgt_dtype = jnp.uint8 if num_classes <= 200 else jnp.int32

    # When the batch can't feed two TensorCores (v7x), split the pixel range
    # into two parallel halves instead. Harmless on single-core v5e/v6e.
    split = 2 if N == 1 else 1

    # Generation-aware tile sizing: double-buffered logits + target blocks must
    # fit a conservative VMEM budget on every generation (v7x has 64 MiB/TC).
    logit_bytes = jnp.dtype(pred_logits.dtype).itemsize
    tgt_bytes = jnp.dtype(tgt_dtype).itemsize
    block_budget = 16 * 1024 * 1024                      # double-buffered blocks
    per_pixel = 2 * (C * logit_bytes + tgt_bytes)
    tp_cap = max(LANE, (block_budget // per_pixel) // LANE * LANE)
    hw_up = pl.cdiv(HW, LANE) * LANE
    TP = min(32768, tp_cap, hw_up)

    chunk = TP * split
    HW_pad = pl.cdiv(HW, chunk) * chunk
    KS = HW_pad // chunk                                  # pixel tiles per split
    pad = HW_pad - HW

    # Free reshapes of the native NCHW layout -- no HBM transpose, no upcast
    # (bf16 logits stream as bf16; the kernel accumulates in f32).
    logits = pred_logits.reshape(N, C, HW)
    tgt = targets.astype(tgt_dtype).reshape(N, 1, HW)
    if pad:
        # Zero logits -> exactly uniform softmax (1/C per class); padded label
        # 0 matches no class.  So padding only adds pad/C to each class's psum,
        # which is subtracted analytically below -- no in-kernel masking.
        logits = jnp.pad(logits, ((0, 0), (0, 0), (0, pad)))
        tgt = jnp.pad(tgt, ((0, 0), (0, 0), (0, pad)))

    partials = pl.pallas_call(
        _soft_jaccard_kernel,
        out_shape=jax.ShapeDtypeStruct((N, split, C, 3), jnp.float32),
        grid_spec=pltpu.PrefetchScalarGridSpec(
            num_scalar_prefetch=0,
            grid=(N, split, KS),
            in_specs=[
                # If v5e profiling shows exposed DMA: pipeline_mode=pl.Buffered(3)
                pl.BlockSpec((None, C, TP), lambda n, s, k: (n, 0, s * KS + k)),
                pl.BlockSpec((None, 1, TP), lambda n, s, k: (n, 0, s * KS + k)),
            ],
            out_specs=pl.BlockSpec((None, None, C, 3),
                                   lambda n, s, k: (n, s, 0, 0)),
        ),
        compiler_params=pltpu.CompilerParams(
            dimension_semantics=("parallel", "parallel", "arbitrary"),
            vmem_limit_bytes=32 * 1024 * 1024),
    )(logits, tgt)

    # Tiny finalize in plain JAX: combine per-(image, split) partials.
    sums = jnp.sum(partials, axis=(0, 1))                 # (C, 3)
    inter, psum, tsum = sums[:, 0], sums[:, 1], sums[:, 2]
    if pad:
        psum = psum - (N * pad) / C                       # analytic pad correction
    iou = inter / (psum + tsum - inter + eps) + eps
    return -jnp.sum(jnp.log(iou)) / num_classes


def _reference(pred_logits, targets, num_classes, eps=1e-5):
    preds = jax.nn.softmax(pred_logits, axis=1)
    loss = 0.0
    for cls in range(num_classes):
        target = (targets - 1 == cls).astype(jnp.float32)
        pred = preds[:, cls]
        inter = jnp.sum(pred * target)
        iou = inter / (jnp.sum(pred) + jnp.sum(target) - inter + eps) + eps
        loss = loss - jnp.log(iou)
    return loss / num_classes


if __name__ == "__main__":
    num_classes = 4
    key = jax.random.PRNGKey(0)
    k1, k2, k3, k4, k5, k6 = jax.random.split(key, 6)

    # Tolerance accounts for the EUP approximate reciprocal in the softmax
    # denominator (exact arithmetic everywhere else).
    TOL = 2e-2

    # Case 1: even tile (no padding path), N=2 batch-parallel.
    N, H, W = 2, 16, 16
    pred_logits = jax.random.normal(k1, (N, num_classes, H, W), dtype=jnp.float32)
    targets = jax.random.randint(k2, (N, H, W), 1, num_classes + 1, dtype=jnp.int32)
    loss = soft_jaccard_loss(pred_logits, targets, num_classes)
    jax.block_until_ready(loss)
    ref = _reference(pred_logits, targets, num_classes)
    assert jnp.allclose(loss, ref, rtol=TOL, atol=TOL), (loss, ref)

    # Case 2: odd spatial size (exercises padding + analytic psum correction).
    N2, H2, W2 = 2, 15, 15
    pred_logits2 = jax.random.normal(k3, (N2, num_classes, H2, W2), dtype=jnp.float32)
    targets2 = jax.random.randint(k4, (N2, H2, W2), 1, num_classes + 1, dtype=jnp.int32)
    loss2 = soft_jaccard_loss(pred_logits2, targets2, num_classes)
    jax.block_until_ready(loss2)
    ref2 = _reference(pred_logits2, targets2, num_classes)
    assert jnp.allclose(loss2, ref2, rtol=TOL, atol=TOL), (loss2, ref2)

    # Case 3: N=1 (exercises the pixel-split parallel axis for v7x).
    N3, H3, W3 = 1, 16, 16
    pred_logits3 = jax.random.normal(k5, (N3, num_classes, H3, W3), dtype=jnp.float32)
    targets3 = jax.random.randint(k6, (N3, H3, W3), 1, num_classes + 1, dtype=jnp.int32)
    loss3 = soft_jaccard_loss(pred_logits3, targets3, num_classes)
    jax.block_until_ready(loss3)
    ref3 = _reference(pred_logits3, targets3, num_classes)
    assert jnp.allclose(loss3, ref3, rtol=TOL, atol=TOL), (loss3, ref3)

    print("KERNEL_OK")
</pallas_src>

<mosaic_0001>
module attributes {stable_mosaic.version = 11 : i64} {
  func.func @_soft_jaccard_kernel(%arg0: i32, %arg1: i32, %arg2: i32, %arg3: memref<1x4x256xf32, #tpu.memory_space<vmem>>, %arg4: memref<1x1x256xi8, #tpu.memory_space<vmem>>, %arg5: memref<1x1x4x3xf32, #tpu.memory_space<vmem>>) attributes {dimension_semantics = [#tpu.dimension_semantics<parallel>, #tpu.dimension_semantics<parallel>, #tpu.dimension_semantics<arbitrary>], iteration_bounds = array<i64: 2, 1, 1>, scalar_prefetch = 0 : i64, scratch_operands = 0 : i64, tpu.core_type = #tpu.core_type<tc>, window_params = [{transform_indices = @transform_0, window_bounds = array<i64: 1, 4, 256>}, {transform_indices = @transform_1, window_bounds = array<i64: 1, 1, 256>}, {transform_indices = @transform_2, window_bounds = array<i64: 1, 1, 4, 3>}]} {
    %c0_i32 = arith.constant 0 : i32
    %0 = arith.cmpi eq, %arg2, %c0_i32 : i32
    %1 = arith.extui %0 : i1 to i32
    %c0_i32_0 = arith.constant 0 : i32
    %2 = arith.cmpi ne, %1, %c0_i32_0 : i32
    scf.if %2 {
      %cst_18 = arith.constant 0.000000e+00 : f32
      %40 = vector.broadcast %cst_18 : f32 to vector<4x3xf32>
      %c0_19 = arith.constant 0 : index
      %c0_20 = arith.constant 0 : index
      %c0_21 = arith.constant 0 : index
      %c0_22 = arith.constant 0 : index
      %41 = vector.load %arg5[%c0_19, %c0_20, %c0_21, %c0_22] : memref<1x1x4x3xf32, #tpu.memory_space<vmem>>, vector<1x1x4x3xf32>
      %42 = vector.shape_cast %41 : vector<1x1x4x3xf32> to vector<4x3xf32>
      %43 = vector.shape_cast %40 : vector<4x3xf32> to vector<1x1x4x3xf32>
      tpu.vector_store %arg5[%c0_19, %c0_20, %c0_21, %c0_22], %43 {strides = array<i32>} : memref<1x1x4x3xf32, #tpu.memory_space<vmem>>, vector<1x1x4x3xf32>,
    } else {
    }
    %c0 = arith.constant 0 : index
    %c0_1 = arith.constant 0 : index
    %c0_2 = arith.constant 0 : index
    %3 = vector.load %arg3[%c0, %c0_1, %c0_2] : memref<1x4x256xf32, #tpu.memory_space<vmem>>, vector<1x4x256xf32>
    %4 = vector.shape_cast %3 : vector<1x4x256xf32> to vector<4x256xf32>
    %cst = arith.constant dense<0xFF800000> : vector<256xf32>
    %5 = vector.multi_reduction <maximumf>, %4, %cst [0] : vector<4x256xf32> to vector<256xf32>
    %6 = vector.shape_cast %5 : vector<256xf32> to vector<1x256xf32>
    %7 = vector.broadcast %6 : vector<1x256xf32> to vector<4x256xf32>
    %8 = arith.subf %4, %7 : vector<4x256xf32>
    %9 = math.exp %8 : vector<4x256xf32>
    %cst_3 = arith.constant dense<0.000000e+00> : vector<256xf32>
    %10 = vector.multi_reduction <add>, %9, %cst_3 [0] : vector<4x256xf32> to vector<256xf32>
    %11 = vector.shape_cast %10 : vector<256xf32> to vector<1x256xf32>
    %12 = tpu.reciprocal %11 {approx = true} : vector<1x256xf32> -> vector<1x256xf32>
    %13 = vector.broadcast %12 : vector<1x256xf32> to vector<4x256xf32>
    %14 = arith.mulf %9, %13 : vector<4x256xf32>
    %c0_4 = arith.constant 0 : index
    %c0_5 = arith.constant 0 : index
    %c0_6 = arith.constant 0 : index
    %15 = vector.load %arg4[%c0_4, %c0_5, %c0_6] : memref<1x1x256xi8, #tpu.memory_space<vmem>>, vector<1x1x256xi8>
    %16 = vector.shape_cast %15 : vector<1x1x256xi8> to vector<1x256xi8>
    %17 = arith.extui %16 : vector<1x256xi8> to vector<1x256xi32>
    %c1_i32 = arith.constant 1 : i32
    %18 = vector.broadcast %c1_i32 : i32 to vector<1x256xi32>
    %19 = arith.subi %17, %18 : vector<1x256xi32>
    %20 = tpu.iota {dimensions = array<i32: 0>} : vector<4x1xi32>
    %21 = vector.broadcast %20 : vector<4x1xi32> to vector<4x256xi32>
    %22 = vector.broadcast %19 : vector<1x256xi32> to vector<4x256xi32>
    %23 = arith.cmpi eq, %21, %22 : vector<4x256xi32>
    %24 = arith.extui %23 : vector<4x256xi1> to vector<4x256xi32>
    %25 = arith.sitofp %24 : vector<4x256xi32> to vector<4x256xf32>
    %26 = arith.mulf %14, %25 : vector<4x256xf32>
    %cst_7 = arith.constant dense<0.000000e+00> : vector<4xf32>
    %27 = vector.multi_reduction <add>, %26, %cst_7 [1] : vector<4x256xf32> to vector<4xf32>
    %28 = vector.shape_cast %27 : vector<4xf32> to vector<4x1xf32>
    %cst_8 = arith.constant dense<0.000000e+00> : vector<4xf32>
    %29 = vector.multi_reduction <add>, %14, %cst_8 [1] : vector<4x256xf32> to vector<4xf32>
    %30 = vector.shape_cast %29 : vector<4xf32> to vector<4x1xf32>
    %cst_9 = arith.constant dense<0.000000e+00> : vector<4xf32>
    %31 = vector.multi_reduction <add>, %25, %cst_9 [1] : vector<4x256xf32> to vector<4xf32>
    %32 = vector.shape_cast %31 : vector<4xf32> to vector<4x1xf32>
    %c0_10 = arith.constant 0 : index
    %c0_11 = arith.constant 0 : index
    %c0_12 = arith.constant 0 : index
    %c0_13 = arith.constant 0 : index
    %33 = vector.load %arg5[%c0_10, %c0_11, %c0_12, %c0_13] : memref<1x1x4x3xf32, #tpu.memory_space<vmem>>, vector<1x1x4x3xf32>
    %34 = vector.shape_cast %33 : vector<1x1x4x3xf32> to vector<4x3xf32>
    %35 = tpu.concatenate %28, %30, %32 in 1 : vector<4x1xf32>, vector<4x1xf32>, vector<4x1xf32> -> vector<4x3xf32>
    %36 = arith.addf %34, %35 : vector<4x3xf32>
    %c0_14 = arith.constant 0 : index
    %c0_15 = arith.constant 0 : index
    %c0_16 = arith.constant 0 : index
    %c0_17 = arith.constant 0 : index
    %37 = vector.load %arg5[%c0_14, %c0_15, %c0_16, %c0_17] : memref<1x1x4x3xf32, #tpu.memory_space<vmem>>, vector<1x1x4x3xf32>
    %38 = vector.shape_cast %37 : vector<1x1x4x3xf32> to vector<4x3xf32>
    %39 = vector.shape_cast %36 : vector<4x3xf32> to vector<1x1x4x3xf32>
    tpu.vector_store %arg5[%c0_14, %c0_15, %c0_16, %c0_17], %39 {strides = array<i32>} : memref<1x1x4x3xf32, #tpu.memory_space<vmem>>, vector<1x1x4x3xf32>,
    return
  }
  func.func @transform_0(%arg0: i32, %arg1: i32, %arg2: i32) -> (i32, i32, i32) {
    %c1_i32 = arith.constant 1 : i32
    %0 = arith.muli %arg1, %c1_i32 : i32
    %1 = arith.addi %0, %arg2 : i32
    %c0_i32 = arith.constant 0 : i32
    %c0_i32_0 = arith.constant 0 : i32
    return %arg0, %c0_i32, %1 : i32, i32, i32
  }
  func.func @transform_1(%arg0: i32, %arg1: i32, %arg2: i32) -> (i32, i32, i32) {
    %c1_i32 = arith.constant 1 : i32
    %0 = arith.muli %arg1, %c1_i32 : i32
    %1 = arith.addi %0, %arg2 : i32
    %c0_i32 = arith.constant 0 : i32
    %c0_i32_0 = arith.constant 0 : i32
    return %arg0, %c0_i32, %1 : i32, i32, i32
  }
  func.func @transform_2(%arg0: i32, %arg1: i32, %arg2: i32) -> (i32, i32, i32, i32) {
    %c0_i32 = arith.constant 0 : i32
    %c0_i32_0 = arith.constant 0 : i32
    %c0_i32_1 = arith.constant 0 : i32
    return %arg0, %arg1, %c0_i32, %c0_i32_0 : i32, i32, i32, i32
  }
}

</mosaic_0001>

<bundles_post_ra>
// kernel: tpu_custom_call.1
= control target key start
LH: loop header
LB: loop body
LE: loop exit
PB: predicated region body
PF: predicated region fallthrough
CT: control target
= control target key end

     0   :  { %7 = vsyncpa [#allocation3], 0  ;;  %s756_s0 = inlined_call_operand.hbm [shape: f32[2,4,256], index: 0, kind: input, shape index: {}]   ;;  %s757_s1 = inlined_call_operand.vmem [shape: u8[2,1,256], index: 1, kind: input, shape index: {}]   ;;  %s758_s2 = inlined_call_operand.vmem [shape: f32[2,1,4,3], index: 2, kind: output, shape index: {}]  }
   0x1   :  { %9 = vsyncpa [#allocation3 + $0x1], 0  ;;  %s636_s9 = smov 0   ;;  %s638_s10 = smov 0  }
   0x2   :  { %s640_s11 = smov 0   ;;  %s642_s12 = smov 0  }
   0x3   :  { %s644_s13 = smov 0   ;;  %s646_s14 = smov 0  }
   0x4 LB: > { %s459_s15 = sadd.s32 4294967295, %s617_s14   ;;  %s34_s16 = sadd.s32 1, %s613_s13  ;;  %s617_s14 = sphi %s646_s14, %s15_s14   ;;  %s613_s13 = sphi %s644_s13, %s766_s13   ;;  %s609_s12 = sphi %s642_s12, %s765_s12   ;;  %s605_s11 = sphi %s640_s11, %s764_s11   ;;  %s601_s10 = sphi %s638_s10, %s763_s10   ;;  %s597_s9 = sphi %s636_s9, %s762_s9  }
   0x5   : > { %p36_p0 = scmp.ge.s32.totalorder %s34_s16, 2  ;;  %s45_s17 = sadd.s32 1, %s605_s11 }
   0x6   : > { %p52_p1 = scmp.ne.s32.totalorder %s605_s11, %s601_s10  ;;  %p53_p2 = scmp.eq.s32.totalorder %s617_s14, 0 }
   0x7   : > { %s768_s16 = smov (%p36_p0, %s34_s16), 0  ;;  %p58_p4 = scmp.ne.s32.totalorder %s601_s10, %s597_s9 }
   0x8   : > { %p672_p3 = por %p53_p2, %p52_p1  ;;  %s40_s19 = ssub.s32 %s613_s13, %s768_s16 }
   0x9   : > { %p59_p5 = scmp.eq.s32.totalorder %s459_s15, 0  ;;  %p43_p6 = scmp.eq.s32.totalorder %s40_s19, 0 }
   0xa   : > { %p482_p8 = scmp.lt.s32.totalorder %s617_s14, 2  ;;  %s140_s22 = sand.u32 1, %s605_s11  }
   0xb   : > { %p679_p7 = por %p59_p5, %p58_p4  ;;  %s475_s23 = sshll.u32 %s613_s13, 7 }
   0xc   : > { %s685_s21 = scalar_select %p43_p6, %s605_s11, %s45_s17  }
   0xd   : > { %s463_s24 = sshll.u32 %s140_s22, 3  ;;  %s153_s27 = scalar_lea.hbm %s756_s0, %s475_s23 }
   0xe   : > { %s144_s28 = scalar_lea.vmem [#allocation2], %s463_s24  ;;  %p694_p9 = pnand %p482_p8, %p672_p3 }
   0xf   : > { %s155_s29 = sshll.u32 %s144_s28, 4  ;;  %p466_p10 = scmp.ge.s32.totalorder %s617_s14, 1  ;;  %s156_s29 = int_to_ptr.vmem [resolvable:$true] %s155_s29 }
  0x10   : > { %p174_p11 = scmp.lt.s32.totalorder %s617_s14, 3  ;;  %s141_s3 = scalar_lea.sflag [#allocation3], %s140_s22 }
  0x11   : > { %p541_p12 = pneg %p694_p9  ;;  %s552_s4 = scalar_lea.vmem %s156_s29, 128 }
  0x12   : > { %p553_p13 = scmp.ne.s32.totalorder %s156_s29, %s552_s4  ;;  %s619_s5 = smov [#allocation2]  }
  0x13   : > { %s557_s6 = sshll.u32 %s619_s5, 4  ;;  %s558_s6 = int_to_ptr.vmem [resolvable:$false] %s557_s6 }
  0x14   : > { %p555_p0 = pnand %p553_p13, %p541_p12  ;;  %s559_s7 = scalar_lea.vmem %s558_s6, 256 }
  0x15   : > { %p560_p2 = scmp.lt.s32.totalorder %s156_s29, %s558_s6  ;;  %p561_p3 = scmp.lt.s32.totalorder %s559_s7, %s552_s4 }
  0x16   : > { %p556_p1 = pneg %p555_p0 }
  0x17   : > { %p562_p4 = por %p561_p3, %p560_p2 }
  0x19   : > { %p563_p5 = pnand %p562_p4, %p556_p1 }
  0x1b   : > { %566 = shalt.err (!%p563_p5)
}
  0x1c   : > { %481 = dma.hbm_to_vmem [thread:$0]  (!%p694_p9), %s153_s27, 128, %s156_s29, %s141_s3  }
  0x1d   : > { %p175_p6 = pnand %p466_p10, %p174_p11 }
  0x1e   : > { %s180_s8 = sand.u32 (!%p175_p6), 1, %s601_s10  }
  0x1f   : > { %178 = sbr.rel (%p175_p6) target bundleno = 260 (0x104), region = 28  ;;  %s467_s9 = sshll.u32 (!%p175_p6), %s180_s8, 3 }
  0x20   : > { %s181_s15 = scalar_lea.sflag (!%p175_p6), [#allocation3], %s180_s8  ;;  %s184_s17 = scalar_lea.vmem (!%p175_p6), [#allocation2], %s467_s9 }
  0x24   : > { %592 = dma.done.wait (%p679_p7), %s181_s15, 128  }
  0x25   : > { %594 = vsyncadd (%p679_p7), %s181_s15, 4294967168  ;;  %p220_p8 = scmp.lt.s32.totalorder %s609_s12, 1  ;;  %v296_v0 = vlaneseq  ;;  %vm240_vm0 = vcmask 19456   ;;  %vm246_vm1 = vcmask 1043456   ;;  %v620_v1 = vmov 0.0   ;;  %v242_v3 = vld [vmem:[%s184_s17] sm:$0xff] }
  0x26   : > { %v244_v5 = vcombine.high %v242_v3, %v242_v3  ;;  %v247_v6 = vsel %vm246_vm1, %v242_v3, -inf  ;;  %vm347_vm4 = vcmask 7168   ;;  %vm349_vm5 = vcmask 15360  }
  0x27   : > { %s770_s12 = smov (!%p220_p8, %s609_s12), 1  ;;  %v297_v2 = vshrl.u32 %v296_v0, 7  ;;  %v248_v8 = vrot.slane %v247_v6, 4 }
  0x28   : > { %s468_s18 = sshll.u32 %s770_s12, 1  ;;  %s469_s19 = sshll.u32 %s770_s12, 2  ;;  %v254_v9 = vsel %vm246_vm1, %v244_v5, -inf }
  0x29   : > { %s226_s24 = scalar_lea.vmem %s757_s1, %s468_s18  ;;  %s721_s27 = scalar_lea.vmem %s758_s2, %s469_s19  ;;  %v300_v11 = vsub.s32 0, %v297_v2  ;;  %v304_v12 = vsub.s32 4, %v297_v2  ;;  %v249_v13 = vmax.f32 %v247_v6, %v248_v8  ;;  %v255_v14 = vrot.slane %v254_v9, 4 }
  0x2a   : > { %241 = vst.msk [vmem:[%s721_s27] sm:$0xf] %vm240_vm0, %v620_v1  ;;  %v292_v4 = vld [vmem:[%s226_s24] sm:$0x3] }
  0x2b   : > { %v293_v7 = vunpack.c.0.s8 %v292_v4  ;;  %v250_v16 = vrot.slane %v249_v13, 2  ;;  %v256_v17 = vmax.f32 %v254_v9, %v255_v14 }
  0x2d   : > { %v294_v10 = vand.u32 255, %v293_v7  ;;  %v251_v20 = vmax.f32 %v249_v13, %v250_v16  ;;  %v257_v21 = vrot.slane %v256_v17, 2 }
  0x2f   : > { %v470_v15 = vadd.s32 4294967295, %v294_v10  ;;  %v252_v24 = vrot.slane %v251_v20, 1  ;;  %v258_v25 = vmax.f32 %v256_v17, %v257_v21 }
  0x31   : > { %v301_v18 = vrot.slane %v470_v15, %v300_v11  ;;  %v305_v19 = vrot.slane %v470_v15, %v304_v12  ;;  %v253_v26 = vmax.f32 %v251_v20, %v252_v24  ;;  %v259_v27 = vrot.slane %v258_v25, 1  ;;  %v346_v6 = vld [vmem:[%s721_s27] sm:$0xf] }
  0x33   : > { %v309_v22 = vrot.slane %v301_v18, %v300_v11  ;;  %v313_v23 = vrot.slane %v305_v19, %v300_v11  ;;  %v260_v32 = vmax.f32 %v258_v25, %v259_v27 }
  0x35   : > { %vm314_vm2 = vcmp.eq.s32.totalorder %v297_v2, %v309_v22  ;;  %vm315_vm3 = vcmp.eq.s32.totalorder %v297_v2, %v313_v23  ;;  %v263_v34 = vcombine.low %v253_v26, %v260_v32 }
  0x36   : > { %v471_v28 = vsel %vm314_vm2, 1.0, %v620_v1  ;;  %v472_v29 = vsel %vm315_vm3, 1.0, %v620_v1 }
  0x37   : > { %v341_v30 = vsel %vm246_vm1, %v471_v28, 0.0  ;;  %v342_v31 = vsel %vm246_vm1, %v472_v29, 0.0  ;;  %v265_v35 = vsub.f32 %v242_v3, %v263_v34  ;;  %v322_v56 = vcombine.low %v471_v28, %v472_v29 }
  0x38   : > { %v343_v33 = vadd.f32 %v342_v31, %v341_v30 }
  0x39   : > { %v266_v36 = vmul.f32 1.442695, %v265_v35 }
  0x3a   : > { %344 = vadd.xlane.f32.xlu1 %v343_v33 }
  0x3b   : > { %533 = vpow2.f32 %v266_v36 }
  0x48   : > { %v534_v37 = vpop.eup %533 }
  0x49   : > { %v269_v38 = vcombine.high %v534_v37, %v534_v37  ;;  %v271_v39 = vsel %vm246_vm1, %v534_v37, 0.0 }
  0x4a   : > { %v272_v40 = vrot.slane %v271_v39, 4 }
  0x4b   : > { %v278_v41 = vsel %vm246_vm1, %v269_v38, 0.0 }
  0x4c   : > { %v273_v42 = vadd.f32 %v272_v40, %v271_v39  ;;  %v279_v43 = vrot.slane %v278_v41, 4 }
  0x4e   : > { %v274_v44 = vrot.slane %v273_v42, 2  ;;  %v280_v45 = vadd.f32 %v279_v43, %v278_v41 }
  0x50   : > { %v275_v46 = vadd.f32 %v274_v44, %v273_v42  ;;  %v281_v47 = vrot.slane %v280_v45, 2 }
  0x52   : > { %v276_v48 = vrot.slane %v275_v46, 1  ;;  %v282_v49 = vadd.f32 %v281_v47, %v280_v45 }
  0x54   : > { %v277_v50 = vadd.f32 %v276_v48, %v275_v46  ;;  %v283_v51 = vrot.slane %v282_v49, 1 }
  0x56   : > { %v284_v52 = vadd.f32 %v283_v51, %v282_v49  ;;  %535 = vrcp.f32 %v277_v50 }
  0x58   : > { %537 = vrcp.f32 %v284_v52 }
  0x63   : > { %v536_v53 = vpop.eup %535 }
  0x65   : > { %v538_v54 = vpop.eup %537 }
  0x66   : > { %v289_v55 = vcombine.low %v536_v53, %v538_v54 }
  0x68   : > { %v291_v57 = vmul.f32 %v534_v37, %v289_v55 }
  0x6a   : > { %v324_v58 = vmul.f32 %v322_v56, %v291_v57  ;;  %v334_v59 = vcombine.high %v291_v57, %v291_v57  ;;  %v336_v63 = vsel %vm246_vm1, %v291_v57, 0.0 }
  0x6c   : > { %v326_v60 = vcombine.high %v324_v58, %v324_v58  ;;  %v328_v61 = vsel %vm246_vm1, %v324_v58, 0.0  ;;  %v337_v0 = vsel %vm246_vm1, %v334_v59, 0.0 }
  0x6d   : > { %v338_v2 = vadd.f32 %v337_v0, %v336_v63 }
  0x6e   : > { %v329_v62 = vsel %vm246_vm1, %v326_v60, 0.0 }
  0x6f   : > { %v330_v1 = vadd.f32 %v329_v62, %v328_v61 }
  0x71   : > { %331 = vadd.xlane.f32.xlu0 %v330_v1 }
  0x75   : > { %339 = vadd.xlane.f32.xlu0 %v338_v2 }
  0xc3   : > { %v345_v4 = vpop.xlane.xlu1 %344 }
  0xfa   : > { %v332_v3 = vpop.xlane.xlu0 %331 }
  0xfe   : > { %v340_v5 = vpop.xlane.xlu0 %339 }
  0xff   : > { %v348_v7 = vsel %vm347_vm4, %v332_v3, %v340_v5 }
 0x100   : > { %v350_v8 = vsel %vm349_vm5, %v348_v7, %v345_v4 }
 0x101   : > { %v351_v9 = vadd.f32 %v350_v8, %v346_v6 }
 0x103   : > { %353 = vst.msk [vmem:[%s721_s27] sm:$0xf] %vm240_vm0, %v351_v9 }
 0x104 PF: > { %s15_s14 = sadd.s32 1, %s617_s14   ;;  %s762_s9 = smov %s601_s10 }
 0x105   : > { %p12_p7 = scmp.ge.s32.totalorder %s15_s14, 4   ;;  %s763_s10 = smov %s605_s11 }
 0x106   : > { %s764_s11 = smov %s685_s21  ;;  %s765_s12 = smov %s613_s13 }
 0x107   : > { %s766_s13 = smov %s768_s16  ;;  %14 = sbr.rel (!%p12_p7) target bundleno = 4 (0x4), region = 75 }
 0x10c   :  { %379 = vsyncpa [#allocation3], 1 }
 0x10d   :  { %381 = vsyncpa [#allocation3 + $0x1], 1 }

</bundles_post_ra>
